<compile_context>
chip_gen: v7x
topology: tpu7x:2x2x1
jax: 0.10.0
libtpu: 0.0.40
codegen_flags: <defaults>
</compile_context>

<pallas_src>
import functools

import jax
import jax.numpy as jnp
from jax.experimental import pallas as pl
from jax.experimental.pallas import tpu as pltpu


def _round_up(n: int, m: int) -> int:
    return ((n + m - 1) // m) * m


def _cdiv(a: int, b: int) -> int:
    return -(-a // b)


def _vmem_capacity_bytes(default: int = 64 << 20) -> int:
    # Smallest of the three generations (v7x) as the safe fallback.
    try:
        info = pltpu.get_tpu_info()
        return int(getattr(info, "vmem_capacity_bytes", default))
    except Exception:
        return default


def _pick_block_b(B, D, Cp, block_b, x_bytes, out_bytes, vmem_cap):
    """Largest batch tile (multiple of 8) whose working set fits in ~half of VMEM."""
    budget = int(vmem_cap * 0.5)                    # headroom for Mosaic scratch
    resident = 2 * D * Cp * x_bytes + 2 * Cp * 4    # tf + bias (worst case: 2 bufs)
    per_row = 2 * D * x_bytes + 2 * Cp * out_bytes  # x + out double buffers, per row
    tb = (budget - resident) // max(per_row, 1)
    tb = max(8, (tb // 8) * 8)
    tb = min(tb, block_b, _round_up(B, 8))
    # v7x has 2 TensorCores: give the "parallel" batch axis >= 2 grid steps
    # whenever the batch allows it (an extra ~0.35us step is harmless on v5e/v6e).
    if B >= 16 and _cdiv(B, tb) < 2:
        tb = min(tb, _round_up(_cdiv(B, 2), 8))
    return max(tb, 8)


def _clip_text_classifier_kernel(has_bias, scale_ref, x_ref, tf_ref, *refs):
    # scale_ref: SMEM (1,)      exp(logit_scale) (post-exp, host-computed)
    # x_ref:     VMEM (TB, D)   embedding tile, matmul dtype (streamed over grid)
    # tf_ref:    VMEM (D, Cp)   frozen text features (matmul dtype, class-padded, resident)
    # bias_ref:  VMEM (1, Cp)   optional f32 bias; padded classes hold -1e30
    # o_ref:     VMEM (TB, Cp)  class probabilities
    if has_bias:
        bias_ref, o_ref = refs
    else:
        (o_ref,) = refs
        bias_ref = None

    x = x_ref[...]
    xf = x.astype(jnp.float32)

    # Fold L2 normalization and exp(logit_scale) into one (TB, 1) factor applied
    # AFTER the matmul: rsqrt goes to the EUP, no (TB, D) divide on the VPU.
    # Clamp so all-zero / masked-garbage rows cannot produce NaN.
    norm2 = jnp.sum(xf * xf, axis=1, keepdims=True)
    row_scale = scale_ref[0] * jax.lax.rsqrt(jnp.maximum(norm2, 1e-30))

    # bf16 x bf16 -> f32 accumulate on the MXU.
    acc = jnp.dot(x, tf_ref[...], preferred_element_type=jnp.float32)
    logits = row_scale * acc
    if has_bias:
        logits = logits + bias_ref[...]

    # Softmax over classes. Padded classes carry a -1e30 bias -> exp == 0 exactly.
    m = jnp.max(logits, axis=1, keepdims=True)
    e = jnp.exp(logits - m)
    denom = jnp.sum(e, axis=1, keepdims=True)
    o_ref[...] = (e * pl.reciprocal(denom, approx=True)).astype(o_ref.dtype)


def clip_text_classifier(x, text_features, logit_scale, bias=None, *,
                         block_b: int = 512,
                         matmul_dtype=jnp.bfloat16,
                         out_dtype=jnp.float32):
    """Eval-mode CLIPTextClassifier.forward.

    x:             (B, D)  input embeddings (f32 or bf16)
    text_features: (D, C)  frozen, column-normalized text features
    logit_scale:   scalar / (1,) pre-exp CLIP logit scale
    bias:          optional (C,) class bias (module default: None)
    """
    B, D = x.shape
    D2, C = text_features.shape
    assert D == D2, (D, D2)

    x_bytes = jnp.dtype(matmul_dtype).itemsize
    out_bytes = jnp.dtype(out_dtype).itemsize

    # --- class dim padded to a lane-dense multiple of 128 ---------------------
    # (K400: C=400 -> Cp=512, which is also 256-aligned for the v6e/v7x MXU.)
    Cp = _round_up(C, 128)
    tf_p = text_features.astype(matmul_dtype)
    if Cp != C:
        tf_p = jnp.zeros((D, Cp), matmul_dtype).at[:, :C].set(tf_p)

    # Bias operand only if a real bias exists or padded classes need masking.
    has_bias = (bias is not None) or (Cp != C)
    if has_bias:
        b_real = (jnp.zeros((C,), jnp.float32) if bias is None
                  else jnp.asarray(bias, jnp.float32).reshape(C))
        bias_p = jnp.full((1, Cp), -1e30, jnp.float32).at[0, :C].set(b_real)

    # --- stream x in the matmul dtype; no full-batch pad / f32 copy -----------
    x_mm = x if x.dtype == jnp.dtype(matmul_dtype) else x.astype(matmul_dtype)

    # --- generation-aware batch tile + explicit VMEM limit --------------------
    vmem_cap = _vmem_capacity_bytes()
    TB = _pick_block_b(B, D, Cp, block_b, x_bytes, out_bytes, vmem_cap)
    n_blocks = _cdiv(B, TB)
    working = (2 * TB * D * x_bytes        # x double buffers
               + 2 * TB * Cp * out_bytes   # out double buffers
               + 2 * D * Cp * x_bytes      # tf (worst case: double buffered)
               + 2 * Cp * 4)               # bias
    vmem_limit = int(min(0.9 * vmem_cap, max(32 << 20, working + (8 << 20))))

    # exp(logit_scale) once on the host; kernel uses the post-exp value.
    scale = jnp.exp(jnp.asarray(logit_scale, jnp.float32).reshape(-1)[:1])

    kernel = functools.partial(_clip_text_classifier_kernel, has_bias)

    def build(single_buffer_invariant: bool):
        inv = ({"pipeline_mode": pl.Buffered(1)} if single_buffer_invariant else {})
        in_specs = [
            pl.BlockSpec(memory_space=pltpu.SMEM),            # exp(logit_scale)
            pl.BlockSpec((TB, D), lambda i: (i, 0)),           # x tile (streamed)
            pl.BlockSpec((D, Cp), lambda i: (0, 0), **inv),    # text features (resident)
        ]
        if has_bias:
            in_specs.append(pl.BlockSpec((1, Cp), lambda i: (0, 0), **inv))  # bias (resident)
        return pl.pallas_call(
            kernel,
            out_shape=jax.ShapeDtypeStruct((B, Cp), out_dtype),
            grid=(n_blocks,),
            in_specs=in_specs,
            out_specs=pl.BlockSpec((TB, Cp), lambda i: (i, 0)),
            compiler_params=pltpu.CompilerParams(
                dimension_semantics=("parallel",),             # megacore sharding on v7x
                vmem_limit_bytes=vmem_limit,
            ),
        )

    args = (scale, x_mm, tf_p) + ((bias_p,) if has_bias else ())
    try:
        out = build(True)(*args)
    except Exception:
        # pipeline_mode=pl.Buffered(1) unsupported on this jax build ->
        # fall back to default double-buffering of the invariant operands.
        out = build(False)(*args)

    return out[:, :C]


if __name__ == "__main__":
    key = jax.random.PRNGKey(0)
    k_x, k_tf = jax.random.split(key)

    B, D, C = 4, 32, 16  # small synthetic shapes (batch, embed_dim, num_classes)

    # Synthetic input embedding.
    x = jax.random.normal(k_x, (B, D), dtype=jnp.float32)

    # Synthetic frozen "text features": random, column-normalized (dim=0),
    # matching get_text_features' final normalization.
    tf = jax.random.normal(k_tf, (D, C), dtype=jnp.float32)
    tf = tf / jnp.linalg.norm(tf, axis=0, keepdims=True)

    # CLIP-style logit_scale parameter (pre-exp); module default has no bias.
    logit_scale = jnp.array([jnp.log(1.0 / 0.07)], dtype=jnp.float32)

    out = clip_text_classifier(x, tf, logit_scale, bias=None)
    out = jax.block_until_ready(out)

    # Pure-JAX f32 reference of the module's eval-mode forward.
    x_n = x / jnp.linalg.norm(x, axis=1, keepdims=True)
    ref = jax.nn.softmax(jnp.exp(logit_scale[0]) * (x_n @ tf), axis=1)

    assert out.shape == (B, C)
    # bf16 MXU operands / bf16 norm input + approx reciprocal -> loosened tolerance.
    assert jnp.allclose(out, ref, rtol=2e-2, atol=2e-2), \
        float(jnp.max(jnp.abs(out - ref)))
    assert jnp.allclose(jnp.sum(out, axis=1), 1.0, atol=1e-2)
    print("KERNEL_OK")
</pallas_src>

<mosaic_0001>
module attributes {stable_mosaic.version = 11 : i64} {
  func.func @_clip_text_classifier_kernel(%arg0: i32, %arg1: memref<1xf32, #tpu.memory_space<smem>>, %arg2: memref<8x32xbf16, #tpu.memory_space<vmem>>, %arg3: memref<32x128xbf16, #tpu.memory_space<vmem>>, %arg4: memref<1x128xf32, #tpu.memory_space<vmem>>, %arg5: memref<8x128xf32, #tpu.memory_space<vmem>>) attributes {dimension_semantics = [#tpu.dimension_semantics<parallel>], iteration_bounds = array<i64: 1>, scalar_prefetch = 0 : i64, scratch_operands = 0 : i64, tpu.core_type = #tpu.core_type<tc>, window_params = [{transform_indices = @transform_0, window_bounds = array<i64: 1>}, {transform_indices = @transform_1, window_bounds = array<i64: 8, 32>}, {pipeline_mode = #tpu.pipeline_mode<synchronous>, transform_indices = @transform_2, window_bounds = array<i64: 32, 128>}, {pipeline_mode = #tpu.pipeline_mode<synchronous>, transform_indices = @transform_3, window_bounds = array<i64: 1, 128>}, {transform_indices = @transform_4, window_bounds = array<i64: 8, 128>}]} {
    %c0 = arith.constant 0 : index
    %c0_0 = arith.constant 0 : index
    %0 = vector.load %arg2[%c0, %c0_0] : memref<8x32xbf16, #tpu.memory_space<vmem>>, vector<8x32xbf16>
    %1 = arith.extf %0 : vector<8x32xbf16> to vector<8x32xf32>
    %2 = arith.mulf %1, %1 : vector<8x32xf32>
    %cst = arith.constant dense<0.000000e+00> : vector<8xf32>
    %3 = vector.multi_reduction <add>, %2, %cst [1] : vector<8x32xf32> to vector<8xf32>
    %4 = vector.shape_cast %3 : vector<8xf32> to vector<8x1xf32>
    %c0_1 = arith.constant 0 : index
    %5 = memref.load %arg1[%c0_1] : memref<1xf32, #tpu.memory_space<smem>>
    %cst_2 = arith.constant 1.000000e-30 : f32
    %6 = vector.broadcast %cst_2 : f32 to vector<8x1xf32>
    %7 = arith.maximumf %4, %6 : vector<8x1xf32>
    %8 = math.rsqrt %7 : vector<8x1xf32>
    %9 = vector.broadcast %5 : f32 to vector<8x1xf32>
    %10 = arith.mulf %9, %8 : vector<8x1xf32>
    %c0_3 = arith.constant 0 : index
    %c0_4 = arith.constant 0 : index
    %11 = vector.load %arg3[%c0_3, %c0_4] : memref<32x128xbf16, #tpu.memory_space<vmem>>, vector<32x128xbf16>
    %cst_5 = arith.constant dense<0.000000e+00> : vector<8x128xf32>
    %12 = tpu.matmul %0, %11, %cst_5 {dimension_numbers = #tpu.dot_dimension_numbers<[1], [0], [0], [1], [0, 0, 1, 1], [], []>} : vector<8x32xbf16>, vector<32x128xbf16>, vector<8x128xf32> -> vector<8x128xf32>
    %13 = vector.broadcast %10 : vector<8x1xf32> to vector<8x128xf32>
    %14 = arith.mulf %13, %12 : vector<8x128xf32>
    %c0_6 = arith.constant 0 : index
    %c0_7 = arith.constant 0 : index
    %15 = vector.load %arg4[%c0_6, %c0_7] : memref<1x128xf32, #tpu.memory_space<vmem>>, vector<1x128xf32>
    %16 = vector.broadcast %15 : vector<1x128xf32> to vector<8x128xf32>
    %17 = arith.addf %14, %16 : vector<8x128xf32>
    %cst_8 = arith.constant dense<0xFF800000> : vector<8xf32>
    %18 = vector.multi_reduction <maximumf>, %17, %cst_8 [1] : vector<8x128xf32> to vector<8xf32>
    %19 = vector.shape_cast %18 : vector<8xf32> to vector<8x1xf32>
    %20 = vector.broadcast %19 : vector<8x1xf32> to vector<8x128xf32>
    %21 = arith.subf %17, %20 : vector<8x128xf32>
    %22 = math.exp %21 : vector<8x128xf32>
    %cst_9 = arith.constant dense<0.000000e+00> : vector<8xf32>
    %23 = vector.multi_reduction <add>, %22, %cst_9 [1] : vector<8x128xf32> to vector<8xf32>
    %24 = vector.shape_cast %23 : vector<8xf32> to vector<8x1xf32>
    %25 = tpu.reciprocal %24 {approx = true} : vector<8x1xf32> -> vector<8x1xf32>
    %26 = vector.broadcast %25 : vector<8x1xf32> to vector<8x128xf32>
    %27 = arith.mulf %22, %26 : vector<8x128xf32>
    %c0_10 = arith.constant 0 : index
    %c0_11 = arith.constant 0 : index
    %28 = vector.load %arg5[%c0_10, %c0_11] : memref<8x128xf32, #tpu.memory_space<vmem>>, vector<8x128xf32>
    tpu.vector_store %arg5[%c0_10, %c0_11], %27 {strides = array<i32>} : memref<8x128xf32, #tpu.memory_space<vmem>>, vector<8x128xf32>,
    return
  }
  func.func @transform_0(%arg0: i32) -> i32 {
    %c0_i32 = arith.constant 0 : i32
    %c0_i32_0 = arith.constant 0 : i32
    return %c0_i32 : i32
  }
  func.func @transform_1(%arg0: i32) -> (i32, i32) {
    %c0_i32 = arith.constant 0 : i32
    %c0_i32_0 = arith.constant 0 : i32
    return %arg0, %c0_i32 : i32, i32
  }
  func.func @transform_2(%arg0: i32) -> (i32, i32) {
    %c0_i32 = arith.constant 0 : i32
    %c0_i32_0 = arith.constant 0 : i32
    %c0_i32_1 = arith.constant 0 : i32
    return %c0_i32, %c0_i32_0 : i32, i32
  }
  func.func @transform_3(%arg0: i32) -> (i32, i32) {
    %c0_i32 = arith.constant 0 : i32
    %c0_i32_0 = arith.constant 0 : i32
    %c0_i32_1 = arith.constant 0 : i32
    return %c0_i32, %c0_i32_0 : i32, i32
  }
  func.func @transform_4(%arg0: i32) -> (i32, i32) {
    %c0_i32 = arith.constant 0 : i32
    %c0_i32_0 = arith.constant 0 : i32
    return %arg0, %c0_i32 : i32, i32
  }
}

module attributes {stable_mosaic.version = 11 : i64} {
  func.func @_clip_text_classifier_kernel(%arg0: i32, %arg1: memref<1xf32, #tpu.memory_space<smem>>, %arg2: memref<8x32xbf16, #tpu.memory_space<vmem>>, %arg3: memref<32x128xbf16, #tpu.memory_space<vmem>>, %arg4: memref<1x128xf32, #tpu.memory_space<vmem>>, %arg5: memref<8x128xf32, #tpu.memory_space<vmem>>) attributes {dimension_semantics = [#tpu.dimension_semantics<parallel>], iteration_bounds = array<i64: 1>, scalar_prefetch = 0 : i64, scratch_operands = 0 : i64, tpu.core_type = #tpu.core_type<tc>, window_params = [{transform_indices = @transform_0, window_bounds = array<i64: 1>}, {transform_indices = @transform_1, window_bounds = array<i64: 8, 32>}, {pipeline_mode = #tpu.pipeline_mode<synchronous>, transform_indices = @transform_2, window_bounds = array<i64: 32, 128>}, {pipeline_mode = #tpu.pipeline_mode<synchronous>, transform_indices = @transform_3, window_bounds = array<i64: 1, 128>}, {transform_indices = @transform_4, window_bounds = array<i64: 8, 128>}]} {
    %c0 = arith.constant 0 : index
    %c0_0 = arith.constant 0 : index
    %0 = vector.load %arg2[%c0, %c0_0] : memref<8x32xbf16, #tpu.memory_space<vmem>>, vector<8x32xbf16>
    %1 = arith.extf %0 : vector<8x32xbf16> to vector<8x32xf32>
    %2 = arith.mulf %1, %1 : vector<8x32xf32>
    %cst = arith.constant dense<0.000000e+00> : vector<8xf32>
    %3 = vector.multi_reduction <add>, %2, %cst [1] : vector<8x32xf32> to vector<8xf32>
    %4 = vector.shape_cast %3 : vector<8xf32> to vector<8x1xf32>
    %c0_1 = arith.constant 0 : index
    %5 = memref.load %arg1[%c0_1] : memref<1xf32, #tpu.memory_space<smem>>
    %cst_2 = arith.constant 1.000000e-30 : f32
    %6 = vector.broadcast %cst_2 : f32 to vector<8x1xf32>
    %7 = arith.maximumf %4, %6 : vector<8x1xf32>
    %8 = math.rsqrt %7 : vector<8x1xf32>
    %9 = vector.broadcast %5 : f32 to vector<8x1xf32>
    %10 = arith.mulf %9, %8 : vector<8x1xf32>
    %c0_3 = arith.constant 0 : index
    %c0_4 = arith.constant 0 : index
    %11 = vector.load %arg3[%c0_3, %c0_4] : memref<32x128xbf16, #tpu.memory_space<vmem>>, vector<32x128xbf16>
    %cst_5 = arith.constant dense<0.000000e+00> : vector<8x128xf32>
    %12 = tpu.matmul %0, %11, %cst_5 {dimension_numbers = #tpu.dot_dimension_numbers<[1], [0], [0], [1], [0, 0, 1, 1], [], []>} : vector<8x32xbf16>, vector<32x128xbf16>, vector<8x128xf32> -> vector<8x128xf32>
    %13 = vector.broadcast %10 : vector<8x1xf32> to vector<8x128xf32>
    %14 = arith.mulf %13, %12 : vector<8x128xf32>
    %c0_6 = arith.constant 0 : index
    %c0_7 = arith.constant 0 : index
    %15 = vector.load %arg4[%c0_6, %c0_7] : memref<1x128xf32, #tpu.memory_space<vmem>>, vector<1x128xf32>
    %16 = vector.broadcast %15 : vector<1x128xf32> to vector<8x128xf32>
    %17 = arith.addf %14, %16 : vector<8x128xf32>
    %cst_8 = arith.constant dense<0xFF800000> : vector<8xf32>
    %18 = vector.multi_reduction <maximumf>, %17, %cst_8 [1] : vector<8x128xf32> to vector<8xf32>
    %19 = vector.shape_cast %18 : vector<8xf32> to vector<8x1xf32>
    %20 = vector.broadcast %19 : vector<8x1xf32> to vector<8x128xf32>
    %21 = arith.subf %17, %20 : vector<8x128xf32>
    %22 = math.exp %21 : vector<8x128xf32>
    %cst_9 = arith.constant dense<0.000000e+00> : vector<8xf32>
    %23 = vector.multi_reduction <add>, %22, %cst_9 [1] : vector<8x128xf32> to vector<8xf32>
    %24 = vector.shape_cast %23 : vector<8xf32> to vector<8x1xf32>
    %25 = tpu.reciprocal %24 {approx = true} : vector<8x1xf32> -> vector<8x1xf32>
    %26 = vector.broadcast %25 : vector<8x1xf32> to vector<8x128xf32>
    %27 = arith.mulf %22, %26 : vector<8x128xf32>
    %c0_10 = arith.constant 0 : index
    %c0_11 = arith.constant 0 : index
    %28 = vector.load %arg5[%c0_10, %c0_11] : memref<8x128xf32, #tpu.memory_space<vmem>>, vector<8x128xf32>
    tpu.vector_store %arg5[%c0_10, %c0_11], %27 {strides = array<i32>} : memref<8x128xf32, #tpu.memory_space<vmem>>, vector<8x128xf32>,
    return
  }
  func.func @transform_0(%arg0: i32) -> i32 {
    %c0_i32 = arith.constant 0 : i32
    %c0_i32_0 = arith.constant 0 : i32
    return %c0_i32 : i32
  }
  func.func @transform_1(%arg0: i32) -> (i32, i32) {
    %c0_i32 = arith.constant 0 : i32
    %c0_i32_0 = arith.constant 0 : i32
    return %arg0, %c0_i32 : i32, i32
  }
  func.func @transform_2(%arg0: i32) -> (i32, i32) {
    %c0_i32 = arith.constant 0 : i32
    %c0_i32_0 = arith.constant 0 : i32
    %c0_i32_1 = arith.constant 0 : i32
    return %c0_i32, %c0_i32_0 : i32, i32
  }
  func.func @transform_3(%arg0: i32) -> (i32, i32) {
    %c0_i32 = arith.constant 0 : i32
    %c0_i32_0 = arith.constant 0 : i32
    %c0_i32_1 = arith.constant 0 : i32
    return %c0_i32, %c0_i32_0 : i32, i32
  }
  func.func @transform_4(%arg0: i32) -> (i32, i32) {
    %c0_i32 = arith.constant 0 : i32
    %c0_i32_0 = arith.constant 0 : i32
    return %arg0, %c0_i32 : i32, i32
  }
}

</mosaic_0001>

<bundles_post_ra>
// kernel: tpu_custom_call.1
= control target key start
LH: loop header
LB: loop body
LE: loop exit
PB: predicated region body
PF: predicated region fallthrough
CT: control target
= control target key end

     0   :  { %10 = vsyncpa [#allocation4], 0  ;;  %s310_s0 = inlined_call_operand.<no memory space> [shape: f32[1], index: 0, kind: input, shape index: {}]   ;;  %s311_s1 = inlined_call_operand.vmem [shape: bf16[4,32], index: 1, kind: input, shape index: {}]   ;;  %s312_s2 = inlined_call_operand.hbm [shape: bf16[32,128], index: 2, kind: input, shape index: {}]   ;;  %s313_s3 = inlined_call_operand.vmem [shape: f32[1,128], index: 3, kind: input, shape index: {}]   ;;  %s314_s4 = inlined_call_operand.hbm [shape: f32[4,128], index: 4, kind: output, shape index: {}]  }
   0x1   :  { %11 = vsyncpa [#allocation5], 0  ;;  %s236_s15 = smov [#allocation3]   ;;  %s188_s19 = scalar_lea.hbm %s312_s2, 256 }
   0x2   :  { %s21_s16 = sshll.u32 %s236_s15, 4  ;;  %p189_p0 = scmp.ne.s32.totalorder %s312_s2, %s188_s19  ;;  %s22_s16 = int_to_ptr.vmem [resolvable:$true] %s21_s16 }
   0x3   :  { %p192_p1 = scmp.lt.u32.totalorder %s188_s19, %s312_s2 }
   0x5   :  { %p194_p2 = pnand %p192_p1, %p189_p0 }
   0x7   :  { %197 = shalt.err (!%p194_p2)
}
   0x8   :  { %s198_s24 = scalar_lea.vmem %s22_s16, 256  ;;  %p203_p4 = scmp.lt.s32.totalorder %s22_s16, %s22_s16 }
   0x9   :  { %p199_p3 = scmp.ne.s32.totalorder %s22_s16, %s198_s24  ;;  %p204_p5 = scmp.lt.s32.totalorder %s198_s24, %s198_s24 }
   0xb   :  { %p205_p6 = por %p204_p5, %p203_p4 }
   0xd   :  { %p206_p7 = pnand %p205_p6, %p199_p3 }
   0xf   :  { %209 = shalt.err (!%p206_p7)
}
  0x10   :  { %s237_s25 = smov 64   ;;  %s238_s26 = smov 4  }
  0x11   :  { %27 = dma.hbm_to_vmem [thread:$0]  %s312_s2, 256, %s22_s16, [#allocation4], %s237_s25, %s237_s25, %s238_s26  }
  0x12   :  { %232 = dma.done.wait [#allocation4], 256  }
  0x13   :  { %233 = vsyncadd [#allocation4], 4294967040  ;;  %v63_v0 = vlaneseq  ;;  %v239_v1 = vmov 0.0   ;;  %vm240_vm0 = vmmov 0   ;;  %v241_v2 = vmov 1983009808  }
  0x14   :  { %165 = vmatprep.subr.bf16.mxu0 %v239_v1  ;;  %169 = vmatprep.mubr.msk.bf16.mxu0 %vm240_vm0, %v239_v1  ;;  %v61_v3 = vunpack.c.l.s4 %v241_v2  ;;  %v180_v6 = vld [vmem:[#allocation3] sm:$0xff]   ;;  %v181_v8 = vld [vmem:[#allocation3 + $0x8] sm:$0xff]   ;;  %vm44_vm1 = vcmask 261120   ;;  %v51_v22 = vstv %s310_s0 }
  0x15   :  { %v64_v5 = vshrl.u32 %v63_v0, 7  ;;  %166 = vmatpush3.bf16.msra.mxu0 %v180_v6  ;;  %v34_v9 = vld [vmem:[%s311_s1] sm:$0x3]  ;;  %v35_v10 = vld [vmem:[%s311_s1 + $0x2] sm:$0x3] }
  0x16   :  { %v62_v4 = vunpack.c.0.s8 %v61_v3  ;;  %167 = vmatprep.subr.bf16.mxu0 %v239_v1  ;;  %v59_v11 = vcombine.low %v34_v9, %v35_v10  ;;  %v36_v12 = vunpack.c.l.bf16 %v34_v9  ;;  %v37_v13 = vunpack.c.l.bf16 %v35_v10  ;;  %v161_v25 = vld [vmem:[%s313_s3] ss:$0 sm:$0xff] }
  0x18   :  { %v65_v7 = vsub.s32 %v62_v4, %v64_v5  ;;  %v38_v15 = vmul.f32 %v36_v12, %v36_v12  ;;  %v39_v16 = vmul.f32 %v37_v13, %v37_v13 }
  0x19   :  { %168 = vmatpush3.bf16.msra.mxu0 %v181_v8 }
  0x1a   :  { %v66_v14 = vrot.slane %v59_v11, %v65_v7  ;;  %v42_v17 = vcombine.low %v38_v15, %v39_v16 }
  0x1c   :  { %170 = vmatmul.mubr.msk.bf16.vlgmr.msra.gmra.mrb[0].mxu0 %vm44_vm1, %v66_v14  ;;  %v45_v18 = vsel %vm44_vm1, %v42_v17, 0.0 }
  0x1d   :  { %46 = vadd.xlane.f32.xlu0 %v45_v18 }
  0xaa   :  { %v47_v19 = vpop.xlane.xlu0 %46 }
  0xab   :  { %v49_v20 = vmax.f32 %v47_v19, 1e-30 }
  0xad   :  { %182 = vrsqrt.f32 %v49_v20 }
  0xb7   :  { %v183_v21 = vpop.eup %182 }
  0xb8   :  { %v52_v23 = vmul.f32 %v183_v21, %v51_v22 }
  0xef   :  { %v116_v24 = vpop.f32.mrb[0].mxu0 }
  0xf0   :  { %v122_v26 = vmul.f32 %v116_v24, %v52_v23  ;;  %v171_v27 = vpop.f32.mrb[1].mxu0 }
  0xf1   :  { %v119_v28 = vpop.f32.mrb[2].mxu0 }
  0xf2   :  { %v172_v29 = vpop.f32.mrb[3].mxu0  ;;  %v130_v30 = vadd.f32 %v161_v25, %v122_v26 }
  0xf4   :  { %131 = vmax.xlane.f32.xlu0 %v130_v30 }
 0x181   :  { %v132_v31 = vpop.xlane.xlu0 %131 }
 0x182   :  { %v133_v32 = vsub.f32 %v130_v30, %v132_v31 }
 0x184   :  { %v134_v33 = vmul.f32 1.442695, %v133_v32 }
 0x186   :  { %184 = vpow2.f32 %v134_v33 }
 0x190   :  { %v185_v34 = vpop.eup %184 }
 0x191   :  { %136 = vadd.xlane.f32.xlu1 %v185_v34 }
 0x21e   :  { %v137_v35 = vpop.xlane.xlu1 %136 }
 0x21f   :  { %186 = vrcp.f32 %v137_v35 }
 0x229   :  { %v187_v36 = vpop.eup %186 }
 0x22a   :  { %v139_v37 = vmul.f32 %v187_v36, %v185_v34 }
 0x22c   :  { %140 = vst [vmem:[#allocation6] sm:$0xff] %v139_v37 }
 0x22d   :  { %145 = vsyncadd [#allocation5], 64  ;;  %s242_s0 = smov [#allocation6]  }
 0x22e   :  { %s146_s3 = sshll.u32 %s242_s0, 4  ;;  %s147_s3 = int_to_ptr.vmem [resolvable:$true] %s146_s3 }
 0x22f   :  { %s210_s9 = scalar_lea.vmem %s147_s3, 64  ;;  %s214_s10 = scalar_lea.vmem %s147_s3, 128 }
 0x230   :  { %p211_p8 = scmp.ne.s32.totalorder %s147_s3, %s210_s9  ;;  %p215_p9 = scmp.lt.s32.totalorder %s147_s3, %s147_s3 }
 0x231   :  { %p216_p10 = scmp.lt.s32.totalorder %s214_s10, %s210_s9 }
 0x233   :  { %p217_p11 = por %p216_p10, %p215_p9 }
 0x235   :  { %p218_p12 = pnand %p217_p11, %p211_p8 }
 0x237   :  { %221 = shalt.err (!%p218_p12)
}
 0x238   :  { %s222_s13 = scalar_lea.hbm %s314_s4, 64 }
 0x239   :  { %p223_p13 = scmp.ne.s32.totalorder %s314_s4, %s222_s13  ;;  %p226_p0 = scmp.lt.u32.totalorder %s222_s13, %s314_s4 }
 0x23b   :  { %p228_p1 = pnand %p226_p0, %p223_p13 }
 0x23d   :  { %231 = shalt.err (!%p228_p1)
}
 0x23e   :  { %152 = dma.vmem_to_hbm [thread:$0]  %s147_s3, 64, %s314_s4, [#allocation5], %s237_s25, %s237_s25, %s238_s26  }
 0x23f   :  { %234 = dma.done.wait [#allocation5], 128  }
 0x240   :  { %235 = vsyncadd [#allocation5], 4294967168 }
 0x241   :  { %156 = vsyncpa [#allocation4], 1 }
 0x242   :  { %157 = vsyncpa [#allocation5], 1 }

// kernel: tpu_custom_call.1
= control target key start
LH: loop header
LB: loop body
LE: loop exit
PB: predicated region body
PF: predicated region fallthrough
CT: control target
= control target key end

     0   :  { %10 = vsyncpa [#allocation4], 0  ;;  %s310_s0 = inlined_call_operand.<no memory space> [shape: f32[1], index: 0, kind: input, shape index: {}]   ;;  %s311_s1 = inlined_call_operand.vmem [shape: bf16[4,32], index: 1, kind: input, shape index: {}]   ;;  %s312_s2 = inlined_call_operand.hbm [shape: bf16[32,128], index: 2, kind: input, shape index: {}]   ;;  %s313_s3 = inlined_call_operand.vmem [shape: f32[1,128], index: 3, kind: input, shape index: {}]   ;;  %s314_s4 = inlined_call_operand.hbm [shape: f32[4,128], index: 4, kind: output, shape index: {}]  }
   0x1   :  { %11 = vsyncpa [#allocation5], 0  ;;  %s236_s15 = smov [#allocation3]   ;;  %s188_s19 = scalar_lea.hbm %s312_s2, 256 }
   0x2   :  { %s21_s16 = sshll.u32 %s236_s15, 4  ;;  %p189_p0 = scmp.ne.s32.totalorder %s312_s2, %s188_s19  ;;  %s22_s16 = int_to_ptr.vmem [resolvable:$true] %s21_s16 }
   0x3   :  { %p192_p1 = scmp.lt.u32.totalorder %s188_s19, %s312_s2 }
   0x5   :  { %p194_p2 = pnand %p192_p1, %p189_p0 }
   0x7   :  { %197 = shalt.err (!%p194_p2)
}
   0x8   :  { %s198_s24 = scalar_lea.vmem %s22_s16, 256  ;;  %p203_p4 = scmp.lt.s32.totalorder %s22_s16, %s22_s16 }
   0x9   :  { %p199_p3 = scmp.ne.s32.totalorder %s22_s16, %s198_s24  ;;  %p204_p5 = scmp.lt.s32.totalorder %s198_s24, %s198_s24 }
   0xb   :  { %p205_p6 = por %p204_p5, %p203_p4 }
   0xd   :  { %p206_p7 = pnand %p205_p6, %p199_p3 }
   0xf   :  { %209 = shalt.err (!%p206_p7)
}
  0x10   :  { %s237_s25 = smov 64   ;;  %s238_s26 = smov 4  }
  0x11   :  { %27 = dma.hbm_to_vmem [thread:$0]  %s312_s2, 256, %s22_s16, [#allocation4], %s237_s25, %s237_s25, %s238_s26  }
  0x12   :  { %232 = dma.done.wait [#allocation4], 256  }
  0x13   :  { %233 = vsyncadd [#allocation4], 4294967040  ;;  %v63_v0 = vlaneseq  ;;  %v239_v1 = vmov 0.0   ;;  %vm240_vm0 = vmmov 0   ;;  %v241_v2 = vmov 1983009808  }
  0x14   :  { %165 = vmatprep.subr.bf16.mxu0 %v239_v1  ;;  %169 = vmatprep.mubr.msk.bf16.mxu0 %vm240_vm0, %v239_v1  ;;  %v61_v3 = vunpack.c.l.s4 %v241_v2  ;;  %v180_v6 = vld [vmem:[#allocation3] sm:$0xff]   ;;  %v181_v8 = vld [vmem:[#allocation3 + $0x8] sm:$0xff]   ;;  %vm44_vm1 = vcmask 261120   ;;  %v51_v22 = vstv %s310_s0 }
  0x15   :  { %v64_v5 = vshrl.u32 %v63_v0, 7  ;;  %166 = vmatpush3.bf16.msra.mxu0 %v180_v6  ;;  %v34_v9 = vld [vmem:[%s311_s1] sm:$0x3]  ;;  %v35_v10 = vld [vmem:[%s311_s1 + $0x2] sm:$0x3] }
  0x16   :  { %v62_v4 = vunpack.c.0.s8 %v61_v3  ;;  %167 = vmatprep.subr.bf16.mxu0 %v239_v1  ;;  %v59_v11 = vcombine.low %v34_v9, %v35_v10  ;;  %v36_v12 = vunpack.c.l.bf16 %v34_v9  ;;  %v37_v13 = vunpack.c.l.bf16 %v35_v10  ;;  %v161_v25 = vld [vmem:[%s313_s3] ss:$0 sm:$0xff] }
  0x18   :  { %v65_v7 = vsub.s32 %v62_v4, %v64_v5  ;;  %v38_v15 = vmul.f32 %v36_v12, %v36_v12  ;;  %v39_v16 = vmul.f32 %v37_v13, %v37_v13 }
  0x19   :  { %168 = vmatpush3.bf16.msra.mxu0 %v181_v8 }
  0x1a   :  { %v66_v14 = vrot.slane %v59_v11, %v65_v7  ;;  %v42_v17 = vcombine.low %v38_v15, %v39_v16 }
  0x1c   :  { %170 = vmatmul.mubr.msk.bf16.vlgmr.msra.gmra.mrb[0].mxu0 %vm44_vm1, %v66_v14  ;;  %v45_v18 = vsel %vm44_vm1, %v42_v17, 0.0 }
  0x1d   :  { %46 = vadd.xlane.f32.xlu0 %v45_v18 }
  0xaa   :  { %v47_v19 = vpop.xlane.xlu0 %46 }
  0xab   :  { %v49_v20 = vmax.f32 %v47_v19, 1e-30 }
  0xad   :  { %182 = vrsqrt.f32 %v49_v20 }
  0xb7   :  { %v183_v21 = vpop.eup %182 }
  0xb8   :  { %v52_v23 = vmul.f32 %v183_v21, %v51_v22 }
  0xef   :  { %v116_v24 = vpop.f32.mrb[0].mxu0 }
  0xf0   :  { %v122_v26 = vmul.f32 %v116_v24, %v52_v23  ;;  %v171_v27 = vpop.f32.mrb[1].mxu0 }
  0xf1   :  { %v119_v28 = vpop.f32.mrb[2].mxu0 }
  0xf2   :  { %v172_v29 = vpop.f32.mrb[3].mxu0  ;;  %v130_v30 = vadd.f32 %v161_v25, %v122_v26 }
  0xf4   :  { %131 = vmax.xlane.f32.xlu0 %v130_v30 }
 0x181   :  { %v132_v31 = vpop.xlane.xlu0 %131 }
 0x182   :  { %v133_v32 = vsub.f32 %v130_v30, %v132_v31 }
 0x184   :  { %v134_v33 = vmul.f32 1.442695, %v133_v32 }
 0x186   :  { %184 = vpow2.f32 %v134_v33 }
 0x190   :  { %v185_v34 = vpop.eup %184 }
 0x191   :  { %136 = vadd.xlane.f32.xlu1 %v185_v34 }
 0x21e   :  { %v137_v35 = vpop.xlane.xlu1 %136 }
 0x21f   :  { %186 = vrcp.f32 %v137_v35 }
 0x229   :  { %v187_v36 = vpop.eup %186 }
 0x22a   :  { %v139_v37 = vmul.f32 %v187_v36, %v185_v34 }
 0x22c   :  { %140 = vst [vmem:[#allocation6] sm:$0xff] %v139_v37 }
 0x22d   :  { %145 = vsyncadd [#allocation5], 64  ;;  %s242_s0 = smov [#allocation6]  }
 0x22e   :  { %s146_s3 = sshll.u32 %s242_s0, 4  ;;  %s147_s3 = int_to_ptr.vmem [resolvable:$true] %s146_s3 }
 0x22f   :  { %s210_s9 = scalar_lea.vmem %s147_s3, 64  ;;  %s214_s10 = scalar_lea.vmem %s147_s3, 128 }
 0x230   :  { %p211_p8 = scmp.ne.s32.totalorder %s147_s3, %s210_s9  ;;  %p215_p9 = scmp.lt.s32.totalorder %s147_s3, %s147_s3 }
 0x231   :  { %p216_p10 = scmp.lt.s32.totalorder %s214_s10, %s210_s9 }
 0x233   :  { %p217_p11 = por %p216_p10, %p215_p9 }
 0x235   :  { %p218_p12 = pnand %p217_p11, %p211_p8 }
 0x237   :  { %221 = shalt.err (!%p218_p12)
}
 0x238   :  { %s222_s13 = scalar_lea.hbm %s314_s4, 64 }
 0x239   :  { %p223_p13 = scmp.ne.s32.totalorder %s314_s4, %s222_s13  ;;  %p226_p0 = scmp.lt.u32.totalorder %s222_s13, %s314_s4 }
 0x23b   :  { %p228_p1 = pnand %p226_p0, %p223_p13 }
 0x23d   :  { %231 = shalt.err (!%p228_p1)
}
 0x23e   :  { %152 = dma.vmem_to_hbm [thread:$0]  %s147_s3, 64, %s314_s4, [#allocation5], %s237_s25, %s237_s25, %s238_s26  }
 0x23f   :  { %234 = dma.done.wait [#allocation5], 128  }
 0x240   :  { %235 = vsyncadd [#allocation5], 4294967168 }
 0x241   :  { %156 = vsyncpa [#allocation4], 1 }
 0x242   :  { %157 = vsyncpa [#allocation5], 1 }

</bundles_post_ra>
